<compile_context>
chip_gen: v5e
topology: v5e:2x2
jax: 0.10.0
libtpu: 0.0.40
codegen_flags: <defaults>
</compile_context>

<pallas_src>
import functools

import jax
import jax.numpy as jnp
from jax.experimental import pallas as pl
from jax.experimental.pallas import tpu as pltpu


def _round_up(x, m):
    return ((x + m - 1) // m) * m


def _vmem_budget_bytes():
    """~75% of physical VMEM for this chip (v5e/v6e 128 MiB, v7x 64 MiB/TC)."""
    cap = 64 << 20  # conservative fallback
    try:
        cap = int(getattr(pltpu.get_tpu_info(), "vmem_capacity_bytes", cap))
    except Exception:
        pass
    return (cap * 3) // 4


_N_TILE_BUCKETS = (1024, 512, 256, 128, 64, 32, 16, 8)


def _select_config(n, d, k_pad, budget):
    """Pick (tile_n, n_pad, tile_k, resident) under a VMEM budget.

    * tile_n comes from a fixed power-of-two bucket set (bounded recompiles)
      and is rejected if batch zero-padding would exceed ~12.5%.
    * resident=True keeps the whole (D, K_pad) weight in VMEM (fetched once,
      reused across all N tiles).  Otherwise the prototype axis is tiled.
    """
    n8 = _round_up(max(n, 1), 8)
    candidates = []
    for t in _N_TILE_BUCKETS:
        if t > n8:
            continue
        n_pad = _round_up(n8, t)
        if t != 8 and (n_pad - n) * 8 > n:  # more than ~12.5% wasted rows
            continue
        candidates.append((t, n_pad))
    if not candidates:
        candidates = [(8, n8)]

    # Path A: fused weight fully VMEM-resident (largest tile_n that fits).
    for t, n_pad in candidates:
        foot = 8 * (t * d + d * k_pad + t * k_pad)  # f32, double-buffered
        if foot <= budget:
            return t, n_pad, k_pad, True

    # Path B: tile the prototype axis (weight too big for VMEM).
    tile_k = 256 if k_pad % 256 == 0 else 128
    for t, n_pad in candidates:
        foot = 8 * (t * d + d * tile_k + t * tile_k)
        if foot <= budget:
            return t, n_pad, tile_k, False
    return 8, n8, tile_k, False  # last resort: smallest tiles


def _matmul_kernel(x_ref, w_ref, o_ref):
    # x_ref: (tile_n, D) activation tile; w_ref: (D, tile_k) weight tile
    # (pre-transposed at init); o_ref: (tile_n, tile_k) lane-dense output.
    # f32 MXU accumulation.
    # TODO(synk): for very large D, pass a higher matmul precision here if the
    # default MXU f32 path drifts from the PyTorch f32 reference.
    o_ref[...] = jnp.dot(
        x_ref[...], w_ref[...], preferred_element_type=jnp.float32
    ).astype(o_ref.dtype)


def _pallas_matmul(x_pad, w_fused, *, tile_n, tile_k, resident, vmem_limit):
    n_pad, d = x_pad.shape
    _, k_pad = w_fused.shape
    n_tiles = n_pad // tile_n

    if resident:
        # Grid over N only; constant weight block index -> Pallas DMAs the
        # whole (D, K_pad) weight once and revisits it for every N tile.
        grid = (n_tiles,)
        in_specs = [
            pl.BlockSpec((tile_n, d), lambda i: (i, 0)),
            pl.BlockSpec((d, k_pad), lambda i: (0, 0)),
        ]
        out_specs = pl.BlockSpec((tile_n, k_pad), lambda i: (i, 0))
        dims = ("parallel",)
        w_reads = 1
    else:
        # K innermost so each core's x tile stays VMEM-resident across the
        # K sweep; both axes "parallel" -> megacore shards the N axis on v7x.
        k_tiles = k_pad // tile_k
        grid = (n_tiles, k_tiles)
        in_specs = [
            pl.BlockSpec((tile_n, d), lambda i, j: (i, 0)),
            pl.BlockSpec((d, tile_k), lambda i, j: (0, j)),
        ]
        out_specs = pl.BlockSpec((tile_n, tile_k), lambda i, j: (i, j))
        dims = ("parallel", "parallel")
        w_reads = n_tiles

    cost = pl.CostEstimate(
        flops=2 * n_pad * d * k_pad,
        transcendentals=0,
        bytes_accessed=4 * (n_pad * d + w_reads * d * k_pad + n_pad * k_pad),
    )
    return pl.pallas_call(
        _matmul_kernel,
        out_shape=jax.ShapeDtypeStruct((n_pad, k_pad), jnp.float32),
        grid_spec=pltpu.PrefetchScalarGridSpec(
            num_scalar_prefetch=0,
            grid=grid,
            in_specs=in_specs,
            out_specs=out_specs,
        ),
        compiler_params=pltpu.CompilerParams(
            dimension_semantics=dims,
            vmem_limit_bytes=int(vmem_limit),
        ),
        cost_estimate=cost,
    )(x_pad, w_fused)


@functools.partial(
    jax.jit,
    static_argnames=("heads", "tile_n", "n_pad", "tile_k", "resident", "vmem_limit"),
)
def _forward_pallas(x, w_fused, *, heads, tile_n, n_pad, tile_k, resident,
                    vmem_limit):
    """pad -> fused Pallas matmul -> per-head slices, all under one jit."""
    n, _ = x.shape
    x32 = x.astype(jnp.float32)
    if n_pad != n:
        x32 = jnp.pad(x32, ((0, n_pad - n), (0, 0)))
    out_pad = _pallas_matmul(
        x32, w_fused, tile_n=tile_n, tile_k=tile_k,
        resident=resident, vmem_limit=vmem_limit,
    )
    outs, off = [], 0
    for k_i in heads:
        outs.append(out_pad[:n, off:off + k_i])
        off += k_i
    return tuple(outs)


@functools.partial(jax.jit, static_argnames=("heads", "k_total"))
def _forward_xla(x, w_fused, *, heads, k_total):
    """Small-problem fallback: one fused XLA dot, no Pallas overhead."""
    out = jnp.dot(x.astype(jnp.float32), w_fused[:, :k_total])
    outs, off = [], 0
    for k_i in heads:
        outs.append(out[:, off:off + k_i])
        off += k_i
    return tuple(outs)


class MultiPrototypes:
    """JAX/Pallas equivalent of the PyTorch MultiPrototypes module.

    All prototype heads share one fused, pre-transposed (D, K_pad) weight;
    forward runs a single fused matmul (Pallas when worthwhile) and returns the
    per-head list by slicing inside the same jitted function.
    """

    def __init__(self, output_dim, n_prototypes, key, use_pallas="auto"):
        self.n_heads = len(n_prototypes)
        self.output_dim = int(output_dim)
        self.n_prototypes = tuple(int(k) for k in n_prototypes)
        self.use_pallas = use_pallas

        # Per-head weights in PyTorch nn.Linear layout (K_i, D), bias=False,
        # default init U(-1/sqrt(fan_in), 1/sqrt(fan_in)).
        bound = 1.0 / (self.output_dim ** 0.5)
        keys = jax.random.split(key, self.n_heads)
        self.weights = [
            jax.random.uniform(
                subkey, (k_i, self.output_dim), dtype=jnp.float32,
                minval=-bound, maxval=bound,
            )
            for k_i, subkey in zip(self.n_prototypes, keys)
        ]

        self.k_total = sum(self.n_prototypes)
        # Lane padding: 128-multiple; prefer 256-alignment for v6e/v7x MXU
        # output fill when the relative waste is small.
        k_pad = _round_up(self.k_total, 128)
        if self.k_total >= 1024 and k_pad % 256 != 0:
            k_pad += 128
        self.k_pad = k_pad

        # Fuse + pre-transpose ONCE at init: (D, K_pad), zero-padded lanes.
        w_cat_t = jnp.concatenate(self.weights, axis=0).T  # (D, K_total)
        self.w_fused = jnp.pad(
            w_cat_t, ((0, 0), (0, self.k_pad - self.k_total)))

        self.vmem_budget = _vmem_budget_bytes()

    def _pallas_worthwhile(self, n):
        # Tiny problems: fixed pallas_call overhead + lane padding dominate.
        flops = 2 * n * self.output_dim * self.k_total
        return n >= 64 and self.k_total >= 128 and flops >= (1 << 22)

    def __call__(self, x):
        n, d = x.shape
        assert d == self.output_dim, (d, self.output_dim)

        if self.use_pallas is True:
            use_pallas = True
        elif self.use_pallas is False:
            use_pallas = False
        else:
            use_pallas = self._pallas_worthwhile(n)

        if not use_pallas:
            return list(_forward_xla(
                x, self.w_fused, heads=self.n_prototypes,
                k_total=self.k_total))

        tile_n, n_pad, tile_k, resident = _select_config(
            n, d, self.k_pad, self.vmem_budget)
        outs = _forward_pallas(
            x, self.w_fused,
            heads=self.n_prototypes,
            tile_n=tile_n, n_pad=n_pad, tile_k=tile_k,
            resident=resident, vmem_limit=self.vmem_budget,
        )
        return list(outs)


if __name__ == "__main__":
    key = jax.random.PRNGKey(0)
    k_x, k_params = jax.random.split(key)

    batch = 8
    output_dim = 32
    n_prototypes = [16, 24, 8]

    x = jax.random.normal(k_x, (batch, output_dim), dtype=jnp.float32)

    # Force the Pallas path so the kernel itself is exercised at demo scale.
    module = MultiPrototypes(output_dim, n_prototypes, k_params, use_pallas=True)
    outs = [jax.block_until_ready(o) for o in module(x)]
    for o, w, k_i in zip(outs, module.weights, n_prototypes):
        assert o.shape == (batch, k_i), o.shape
        ref = x @ w.T
        assert jnp.allclose(o, ref, atol=1e-5, rtol=1e-5), \
            "pallas mismatch vs reference"

    # Auto dispatch: this tiny problem takes the fused-XLA fallback path;
    # same forward semantics.
    module_auto = MultiPrototypes(output_dim, n_prototypes, k_params,
                                  use_pallas="auto")
    outs_auto = [jax.block_until_ready(o) for o in module_auto(x)]
    for o, w, k_i in zip(outs_auto, module_auto.weights, n_prototypes):
        assert o.shape == (batch, k_i), o.shape
        assert jnp.allclose(o, x @ w.T, atol=1e-5, rtol=1e-5), \
            "fallback mismatch vs reference"

    print("KERNEL_OK")
</pallas_src>

<mosaic_0001>
module attributes {stable_mosaic.version = 11 : i64} {
  func.func @_matmul_kernel(%arg0: i32, %arg1: memref<8x32xf32, #tpu.memory_space<vmem>>, %arg2: memref<32x128xf32, #tpu.memory_space<vmem>>, %arg3: memref<8x128xf32, #tpu.memory_space<vmem>>) attributes {dimension_semantics = [#tpu.dimension_semantics<parallel>], iteration_bounds = array<i64: 1>, scalar_prefetch = 0 : i64, scratch_operands = 0 : i64, tpu.core_type = #tpu.core_type<tc>, window_params = [{transform_indices = @transform_0, window_bounds = array<i64: 8, 32>}, {pipeline_mode = #tpu.pipeline_mode<synchronous>, transform_indices = @transform_1, window_bounds = array<i64: 32, 128>}, {transform_indices = @transform_2, window_bounds = array<i64: 8, 128>}]} {
    %c0 = arith.constant 0 : index
    %c0_0 = arith.constant 0 : index
    %0 = vector.load %arg1[%c0, %c0_0] : memref<8x32xf32, #tpu.memory_space<vmem>>, vector<8x32xf32>
    %c0_1 = arith.constant 0 : index
    %c0_2 = arith.constant 0 : index
    %1 = vector.load %arg2[%c0_1, %c0_2] : memref<32x128xf32, #tpu.memory_space<vmem>>, vector<32x128xf32>
    %cst = arith.constant dense<0.000000e+00> : vector<8x128xf32>
    %2 = tpu.matmul %0, %1, %cst {dimension_numbers = #tpu.dot_dimension_numbers<[1], [0], [0], [1], [0, 0, 1, 1], [], []>} : vector<8x32xf32>, vector<32x128xf32>, vector<8x128xf32> -> vector<8x128xf32>
    %c0_3 = arith.constant 0 : index
    %c0_4 = arith.constant 0 : index
    %3 = vector.load %arg3[%c0_3, %c0_4] : memref<8x128xf32, #tpu.memory_space<vmem>>, vector<8x128xf32>
    tpu.vector_store %arg3[%c0_3, %c0_4], %2 {strides = array<i32>} : memref<8x128xf32, #tpu.memory_space<vmem>>, vector<8x128xf32>,
    return
  }
  func.func @transform_0(%arg0: i32) -> (i32, i32) {
    %c0_i32 = arith.constant 0 : i32
    %c0_i32_0 = arith.constant 0 : i32
    return %arg0, %c0_i32 : i32, i32
  }
  func.func @transform_1(%arg0: i32) -> (i32, i32) {
    %c0_i32 = arith.constant 0 : i32
    %c0_i32_0 = arith.constant 0 : i32
    %c0_i32_1 = arith.constant 0 : i32
    return %c0_i32, %c0_i32_0 : i32, i32
  }
  func.func @transform_2(%arg0: i32) -> (i32, i32) {
    %c0_i32 = arith.constant 0 : i32
    %c0_i32_0 = arith.constant 0 : i32
    return %arg0, %c0_i32 : i32, i32
  }
}

</mosaic_0001>

<bundles_post_ra>
// kernel: _forward_pallas.1
= control target key start
LH: loop header
LB: loop body
LE: loop exit
PB: predicated region body
PF: predicated region fallthrough
CT: control target
= control target key end

     0   :  { %7 = vsyncpa [#allocation3], 0  ;;  %s162_s0 = inlined_call_operand.hbm [shape: f32[8,32], index: 0, kind: input, shape index: {}]   ;;  %s163_s1 = inlined_call_operand.hbm [shape: f32[32,128], index: 1, kind: input, shape index: {}]   ;;  %s164_s2 = inlined_call_operand.vmem [shape: f32[8,128], index: 2, kind: output, shape index: {}]  }
   0x1   :  { %s14_s11 = sshll.u32 %s162_s0, 4  ;;  %s15_s11 = int_to_ptr.hbm [resolvable:$true] %s14_s11 }
   0x2   :  { %8 = vsyncpa [#allocation5], 0  ;;  %s134_s12 = smov [#allocation2]   ;;  %s24_s16 = sshll.u32 %s163_s1, 4  ;;  %s25_s16 = int_to_ptr.hbm [resolvable:$true] %s24_s16 }
   0x3   :  { %s16_s13 = sshll.u32 %s134_s12, 4  ;;  %s135_s17 = smov [#allocation4]   ;;  %s17_s13 = int_to_ptr.vmem [resolvable:$true] %s16_s13 }
   0x4   :  { %19 = dma.hbm_to_vmem [thread:$0]  %s15_s11, 128, %s17_s13, [#allocation3]  }
   0x5   :  { %s26_s18 = sshll.u32 %s135_s17, 4  ;;  %s136_s19 = smov 128   ;;  %s27_s18 = int_to_ptr.vmem [resolvable:$true] %s26_s18 }
   0x6   :  { %s137_s20 = smov 8  }
   0x7   :  { %32 = dma.hbm_to_vmem [thread:$0]  %s25_s16, 512, %s27_s18, [#allocation5], %s136_s19, %s136_s19, %s137_s20  }
   0x8   :  { %130 = dma.done.wait [#allocation3], 128  }
   0x9   :  { %131 = vsyncadd [#allocation3], 4294967168 }
   0xa   :  { %132 = dma.done.wait [#allocation5], 512  }
   0xb   :  { %133 = vsyncadd [#allocation5], 4294966784  ;;  %v45_v0 = vld [vmem:[#allocation4 + $0x18] sm:$0xff]  ;;  %v44_v1 = vld [vmem:[#allocation4 + $0x10] sm:$0xff]  ;;  %vm46_vm0 = vcmask 261120  }
   0xc   :  { %62 = vmatpush.msra.mxu0 %v45_v0  ;;  %v43_v2 = vld [vmem:[#allocation4 + $0x8] sm:$0xff]  ;;  %v42_v3 = vld [vmem:[#allocation4] sm:$0xff]  ;;  %v41_v4 = vld [vmem:[#allocation2] sm:$0xff] }
   0xe   :  { %63 = vmatpush.msra.mxu0 %v44_v1 }
  0x10   :  { %64 = vmatpush.msra.mxu0 %v43_v2 }
  0x12   :  { %65 = vmatpush.msra.mxu0 %v42_v3 }
  0x13   :  { %77 = vmatmul.msk.f32.vlgmr.msra.gmra.mxu0 %vm46_vm0, %v41_v4 }
  0x90   :  { %v67_v5 = vpop.f32.mrf.mxu0 }
  0x91   :  { %70 = vst [vmem:[%s164_s2] sm:$0xff] %v67_v5 }
  0x92   :  { %75 = vsyncpa [#allocation3], 1 }
  0x93   :  { %76 = vsyncpa [#allocation5], 1 }

</bundles_post_ra>
